<compile_context>
chip_gen: v6e
topology: v6e:2x2x1
jax: 0.10.0
libtpu: 0.0.40
codegen_flags: <defaults>
</compile_context>

<pallas_src>
import jax
import jax.numpy as jnp
from jax.experimental import pallas as pl
from jax.experimental.pallas import tpu as pltpu


def _round_up(x, m):
    return ((x + m - 1) // m) * m


def ffn_kernel(x_ref, w1_ref, b1_ref, w2_ref, b2_ref, o_ref, acc_ref):
    # Grid: (M tiles, d_ff tiles). Axis 1 is the d_ff reduction axis.
    # x_ref:  (tm, ninp_p)   bf16
    # w1_ref: (ninp_p, tk)   bf16        b1_ref: (1, tk)      f32
    # w2_ref: (tk, ninp_p)   bf16        b2_ref: (1, ninp_p)  f32
    # o_ref:  (tm, ninp_p)               acc_ref: (tm, ninp_p) f32 scratch
    k = pl.program_id(1)

    @pl.when(k == 0)
    def _():
        acc_ref[...] = jnp.zeros_like(acc_ref)

    # h_chunk = ReLU(x @ W1[:, k*tk:(k+1)*tk] + b1_chunk)   (f32 epilogue)
    h = jnp.dot(x_ref[...], w1_ref[...], preferred_element_type=jnp.float32)
    h = jnp.maximum(h + b1_ref[...], 0.0)  # ReLU; dropout = identity (eval)

    # Accumulate y += h_chunk @ W2[k*tk:(k+1)*tk, :] in f32.
    acc_ref[...] += jnp.dot(h.astype(w2_ref.dtype), w2_ref[...],
                            preferred_element_type=jnp.float32)

    @pl.when(k == pl.num_programs(1) - 1)
    def _():
        o_ref[...] = (acc_ref[...] + b2_ref[...]).astype(o_ref.dtype)


@jax.jit
def feed_forward(x, w1, b1, w2, b2):
    """x: (batch, seq, ninp) -> (batch, seq, ninp). w1:(ninp,d_ff), w2:(d_ff,ninp)."""
    batch, seq, ninp = x.shape
    d_ff = w1.shape[1]
    M = batch * seq

    b1 = b1.reshape(1, -1)
    b2 = b2.reshape(1, -1)

    # Shape-dependent tile sizes.
    tm = min(512, _round_up(M, 8))          # large M tile, multiple of 8
    tk = min(512, _round_up(d_ff, 256))     # d_ff chunk, multiple of 256

    M_p = _round_up(M, tm)                  # pad M so the grid has no tail tile
    ninp_p = _round_up(ninp, 128)           # lane-dense feature dim
    d_ff_p = _round_up(d_ff, tk)

    # Pad + cast (zero padding keeps the math exact; padding is sliced off below;
    # zero columns of W1 give h=ReLU(b1_pad)=0 there since b1 padding is 0, and
    # zero rows of W2 contribute nothing to the output).
    x2d = x.reshape(M, ninp).astype(jnp.bfloat16)
    x_p = jnp.zeros((M_p, ninp_p), jnp.bfloat16).at[:M, :ninp].set(x2d)
    w1_p = jnp.zeros((ninp_p, d_ff_p), jnp.bfloat16).at[:ninp, :d_ff].set(
        w1.astype(jnp.bfloat16))
    b1_p = jnp.zeros((1, d_ff_p), jnp.float32).at[:, :d_ff].set(
        b1.astype(jnp.float32))
    w2_p = jnp.zeros((d_ff_p, ninp_p), jnp.bfloat16).at[:d_ff, :ninp].set(
        w2.astype(jnp.bfloat16))
    b2_p = jnp.zeros((1, ninp_p), jnp.float32).at[:, :ninp].set(
        b2.astype(jnp.float32))

    grid = (M_p // tm, d_ff_p // tk)

    out_p = pl.pallas_call(
        ffn_kernel,
        out_shape=jax.ShapeDtypeStruct((M_p, ninp_p), x.dtype),
        grid_spec=pltpu.PrefetchScalarGridSpec(
            num_scalar_prefetch=0,
            grid=grid,
            in_specs=[
                pl.BlockSpec((tm, ninp_p), lambda i, k: (i, 0)),    # x tile
                pl.BlockSpec((ninp_p, tk), lambda i, k: (0, k)),    # W1 chunk
                pl.BlockSpec((1, tk), lambda i, k: (0, k)),         # b1 chunk
                pl.BlockSpec((tk, ninp_p), lambda i, k: (k, 0)),    # W2 chunk
                pl.BlockSpec((1, ninp_p), lambda i, k: (0, 0)),     # b2
            ],
            out_specs=pl.BlockSpec((tm, ninp_p), lambda i, k: (i, 0)),
            scratch_shapes=[pltpu.VMEM((tm, ninp_p), jnp.float32)],
        ),
        compiler_params=pltpu.CompilerParams(
            dimension_semantics=("parallel", "arbitrary"),
            vmem_limit_bytes=64 * 1024 * 1024,
        ),
    )(x_p, w1_p, b1_p, w2_p, b2_p)

    return out_p[:M, :ninp].reshape(batch, seq, ninp)


def init_params(key, ninp, d_ff, dtype=jnp.float32):
    """Deterministic nn.Linear-style init (uniform +/- 1/sqrt(fan_in))."""
    k1, k2, k3, k4 = jax.random.split(key, 4)
    bound1 = 1.0 / (ninp ** 0.5)
    bound2 = 1.0 / (d_ff ** 0.5)
    # Stored already-transposed relative to nn.Linear: (in_features, out_features).
    w1 = jax.random.uniform(k1, (ninp, d_ff), dtype, -bound1, bound1)
    b1 = jax.random.uniform(k2, (1, d_ff), dtype, -bound1, bound1)
    w2 = jax.random.uniform(k3, (d_ff, ninp), dtype, -bound2, bound2)
    b2 = jax.random.uniform(k4, (1, ninp), dtype, -bound2, bound2)
    return w1, b1, w2, b2


if __name__ == "__main__":
    batch, seq, ninp, d_ff = 2, 8, 32, 128  # small shapes consistent with the module

    key = jax.random.PRNGKey(0)
    kx, kp = jax.random.split(key)
    x = jax.random.normal(kx, (batch, seq, ninp), jnp.float32)
    w1, b1, w2, b2 = init_params(kp, ninp, d_ff)

    out = feed_forward(x, w1, b1, w2, b2)
    out = jax.block_until_ready(out)

    # Pure-JAX reference mirroring the kernel's bf16 inputs / f32 accumulation
    # (eval-mode dropout == identity).
    xb = x.reshape(-1, ninp).astype(jnp.bfloat16).astype(jnp.float32)
    w1b = w1.astype(jnp.bfloat16).astype(jnp.float32)
    w2b = w2.astype(jnp.bfloat16).astype(jnp.float32)
    h = jnp.maximum(xb @ w1b + b1, 0.0)
    h = h.astype(jnp.bfloat16).astype(jnp.float32)
    ref = (h @ w2b + b2).reshape(batch, seq, ninp)

    assert out.shape == (batch, seq, ninp)
    assert jnp.allclose(out, ref, atol=1e-2, rtol=1e-2), (
        float(jnp.max(jnp.abs(out - ref))))

    print("KERNEL_OK")
</pallas_src>

<mosaic_0001>
module attributes {stable_mosaic.version = 11 : i64} {
  func.func @ffn_kernel(%arg0: i32, %arg1: i32, %arg2: memref<16x128xbf16, #tpu.memory_space<vmem>>, %arg3: memref<128x256xbf16, #tpu.memory_space<vmem>>, %arg4: memref<1x256xf32, #tpu.memory_space<vmem>>, %arg5: memref<256x128xbf16, #tpu.memory_space<vmem>>, %arg6: memref<1x128xf32, #tpu.memory_space<vmem>>, %arg7: memref<16x128xf32, #tpu.memory_space<vmem>>, %arg8: memref<16x128xf32, #tpu.memory_space<vmem>>) attributes {dimension_semantics = [#tpu.dimension_semantics<parallel>, #tpu.dimension_semantics<arbitrary>], iteration_bounds = array<i64: 1, 1>, scalar_prefetch = 0 : i64, scratch_operands = 1 : i64, tpu.core_type = #tpu.core_type<tc>, window_params = [{transform_indices = @transform_0, window_bounds = array<i64: 16, 128>}, {transform_indices = @transform_1, window_bounds = array<i64: 128, 256>}, {transform_indices = @transform_2, window_bounds = array<i64: 1, 256>}, {transform_indices = @transform_3, window_bounds = array<i64: 256, 128>}, {pipeline_mode = #tpu.pipeline_mode<synchronous>, transform_indices = @transform_4, window_bounds = array<i64: 1, 128>}, {transform_indices = @transform_5, window_bounds = array<i64: 16, 128>}]} {
    %c0_i32 = arith.constant 0 : i32
    %0 = arith.cmpi eq, %arg1, %c0_i32 : i32
    %1 = arith.extui %0 : i1 to i32
    %c0_i32_0 = arith.constant 0 : i32
    %2 = arith.cmpi ne, %1, %c0_i32_0 : i32
    scf.if %2 {
      %cst_16 = arith.constant 0.000000e+00 : f32
      %20 = vector.broadcast %cst_16 : f32 to vector<16x128xf32>
      %c0_17 = arith.constant 0 : index
      %c0_18 = arith.constant 0 : index
      %21 = vector.load %arg8[%c0_17, %c0_18] : memref<16x128xf32, #tpu.memory_space<vmem>>, vector<16x128xf32>
      tpu.vector_store %arg8[%c0_17, %c0_18], %20 {strides = array<i32>} : memref<16x128xf32, #tpu.memory_space<vmem>>, vector<16x128xf32>,
    } else {
    }
    %c0 = arith.constant 0 : index
    %c0_1 = arith.constant 0 : index
    %3 = vector.load %arg2[%c0, %c0_1] : memref<16x128xbf16, #tpu.memory_space<vmem>>, vector<16x128xbf16>
    %c0_2 = arith.constant 0 : index
    %c0_3 = arith.constant 0 : index
    %4 = vector.load %arg3[%c0_2, %c0_3] : memref<128x256xbf16, #tpu.memory_space<vmem>>, vector<128x256xbf16>
    %cst = arith.constant dense<0.000000e+00> : vector<16x256xf32>
    %5 = tpu.matmul %3, %4, %cst {dimension_numbers = #tpu.dot_dimension_numbers<[1], [0], [0], [1], [0, 0, 1, 1], [], []>} : vector<16x128xbf16>, vector<128x256xbf16>, vector<16x256xf32> -> vector<16x256xf32>
    %c0_4 = arith.constant 0 : index
    %c0_5 = arith.constant 0 : index
    %6 = vector.load %arg4[%c0_4, %c0_5] : memref<1x256xf32, #tpu.memory_space<vmem>>, vector<1x256xf32>
    %7 = vector.broadcast %6 : vector<1x256xf32> to vector<16x256xf32>
    %8 = arith.addf %5, %7 : vector<16x256xf32>
    %cst_6 = arith.constant 0.000000e+00 : f32
    %9 = vector.broadcast %cst_6 : f32 to vector<16x256xf32>
    %10 = arith.maximumf %8, %9 : vector<16x256xf32>
    %c0_7 = arith.constant 0 : index
    %c0_8 = arith.constant 0 : index
    %11 = vector.load %arg8[%c0_7, %c0_8] : memref<16x128xf32, #tpu.memory_space<vmem>>, vector<16x128xf32>
    %12 = arith.truncf %10 : vector<16x256xf32> to vector<16x256xbf16>
    %c0_9 = arith.constant 0 : index
    %c0_10 = arith.constant 0 : index
    %13 = vector.load %arg5[%c0_9, %c0_10] : memref<256x128xbf16, #tpu.memory_space<vmem>>, vector<256x128xbf16>
    %cst_11 = arith.constant dense<0.000000e+00> : vector<16x128xf32>
    %14 = tpu.matmul %12, %13, %cst_11 {dimension_numbers = #tpu.dot_dimension_numbers<[1], [0], [0], [1], [0, 0, 1, 1], [], []>} : vector<16x256xbf16>, vector<256x128xbf16>, vector<16x128xf32> -> vector<16x128xf32>
    %15 = arith.addf %11, %14 : vector<16x128xf32>
    %c0_12 = arith.constant 0 : index
    %c0_13 = arith.constant 0 : index
    %16 = vector.load %arg8[%c0_12, %c0_13] : memref<16x128xf32, #tpu.memory_space<vmem>>, vector<16x128xf32>
    tpu.vector_store %arg8[%c0_12, %c0_13], %15 {strides = array<i32>} : memref<16x128xf32, #tpu.memory_space<vmem>>, vector<16x128xf32>,
    %c0_i32_14 = arith.constant 0 : i32
    %17 = arith.cmpi eq, %arg1, %c0_i32_14 : i32
    %18 = arith.extui %17 : i1 to i32
    %c0_i32_15 = arith.constant 0 : i32
    %19 = arith.cmpi ne, %18, %c0_i32_15 : i32
    scf.if %19 {
      %c0_16 = arith.constant 0 : index
      %c0_17 = arith.constant 0 : index
      %20 = vector.load %arg8[%c0_16, %c0_17] : memref<16x128xf32, #tpu.memory_space<vmem>>, vector<16x128xf32>
      %c0_18 = arith.constant 0 : index
      %c0_19 = arith.constant 0 : index
      %21 = vector.load %arg6[%c0_18, %c0_19] : memref<1x128xf32, #tpu.memory_space<vmem>>, vector<1x128xf32>
      %22 = vector.broadcast %21 : vector<1x128xf32> to vector<16x128xf32>
      %23 = arith.addf %20, %22 : vector<16x128xf32>
      %c0_20 = arith.constant 0 : index
      %c0_21 = arith.constant 0 : index
      %24 = vector.load %arg7[%c0_20, %c0_21] : memref<16x128xf32, #tpu.memory_space<vmem>>, vector<16x128xf32>
      tpu.vector_store %arg7[%c0_20, %c0_21], %23 {strides = array<i32>} : memref<16x128xf32, #tpu.memory_space<vmem>>, vector<16x128xf32>,
    } else {
    }
    return
  }
  func.func @transform_0(%arg0: i32, %arg1: i32) -> (i32, i32) {
    %c0_i32 = arith.constant 0 : i32
    %c0_i32_0 = arith.constant 0 : i32
    return %arg0, %c0_i32 : i32, i32
  }
  func.func @transform_1(%arg0: i32, %arg1: i32) -> (i32, i32) {
    %c0_i32 = arith.constant 0 : i32
    %c0_i32_0 = arith.constant 0 : i32
    return %c0_i32, %arg1 : i32, i32
  }
  func.func @transform_2(%arg0: i32, %arg1: i32) -> (i32, i32) {
    %c0_i32 = arith.constant 0 : i32
    %c0_i32_0 = arith.constant 0 : i32
    return %c0_i32, %arg1 : i32, i32
  }
  func.func @transform_3(%arg0: i32, %arg1: i32) -> (i32, i32) {
    %c0_i32 = arith.constant 0 : i32
    %c0_i32_0 = arith.constant 0 : i32
    return %arg1, %c0_i32 : i32, i32
  }
  func.func @transform_4(%arg0: i32, %arg1: i32) -> (i32, i32) {
    %c0_i32 = arith.constant 0 : i32
    %c0_i32_0 = arith.constant 0 : i32
    %c0_i32_1 = arith.constant 0 : i32
    return %c0_i32, %c0_i32_0 : i32, i32
  }
  func.func @transform_5(%arg0: i32, %arg1: i32) -> (i32, i32) {
    %c0_i32 = arith.constant 0 : i32
    %c0_i32_0 = arith.constant 0 : i32
    return %arg0, %c0_i32 : i32, i32
  }
}

</mosaic_0001>

<bundles_post_ra>
// kernel: feed_forward.1
= control target key start
LH: loop header
LB: loop body
LE: loop exit
PB: predicated region body
PF: predicated region fallthrough
CT: control target
= control target key end

     0   :  { %v485_v1 = vmov 0   ;;  %v47_v34 = vlaneseq  ;;  %s627_s1 = inlined_call_operand.vmem [shape: bf16[128,256], index: 1, kind: input, shape index: {}]   ;;  %s628_s0 = inlined_call_operand.vmem [shape: bf16[16,128], index: 0, kind: input, shape index: {}]   ;;  %s629_s3 = inlined_call_operand.vmem [shape: bf16[256,128], index: 3, kind: input, shape index: {}]   ;;  %s630_s2 = inlined_call_operand.vmem [shape: f32[1,256], index: 2, kind: input, shape index: {}]   ;;  %s631_s4 = inlined_call_operand.vmem [shape: f32[1,128], index: 4, kind: input, shape index: {}]   ;;  %s632_s5 = inlined_call_operand.vmem [shape: f32[16,128], index: 5, kind: output, shape index: {}]  }
   0x1   :  { %v444_v0 = vld [vmem:[%s627_s1 + $0x74] ss:$8 sps:$4 sm:$0xff]   ;;  %175 = vmatprep.mubr.bf16.mxu0 %v485_v1  ;;  %v446_v2 = vld [vmem:[%s627_s1 + $0x70] ss:$8 sps:$4 sm:$0xff]   ;;  %v447_v3 = vld [vmem:[%s627_s1 + $0x64] ss:$8 sps:$4 sm:$0xff]  }
   0x2   :  { %143 = vmatprep.subr.bf16.mxu0 %v444_v0  ;;  %v449_v4 = vld [vmem:[%s627_s1 + $0x60] ss:$8 sps:$4 sm:$0xff]   ;;  %v450_v5 = vld [vmem:[%s627_s1 + $0x54] ss:$8 sps:$4 sm:$0xff]   ;;  %v452_v6 = vld [vmem:[%s627_s1 + $0x50] ss:$8 sps:$4 sm:$0xff]  }
   0x3   :  { %144 = vmatpush1.bf16.msra.mxu0 %v446_v2  ;;  %v453_v7 = vld [vmem:[%s627_s1 + $0x44] ss:$8 sps:$4 sm:$0xff]   ;;  %v455_v8 = vld [vmem:[%s627_s1 + $0x40] ss:$8 sps:$4 sm:$0xff]   ;;  %v456_v9 = vld [vmem:[%s627_s1 + $0x34] ss:$8 sps:$4 sm:$0xff]  }
   0x4   :  { %145 = vmatprep.subr.bf16.mxu0 %v447_v3  ;;  %v469_v10 = vld [vmem:[%s629_s3 + $0x78] sm:$0xff]   ;;  %v459_v13 = vld [vmem:[%s627_s1 + $0x24] ss:$8 sps:$4 sm:$0xff]   ;;  %v471_v14 = vld [vmem:[%s629_s3 + $0x70] sm:$0xff]   ;;  %v48_v35 = vshrl.u32 %v47_v34, 7 }
   0x5   :  { %v458_v11 = vld [vmem:[%s627_s1 + $0x30] ss:$8 sps:$4 sm:$0xff]   ;;  %421 = vmatprep.subr.bf16.mxu1 %v469_v10  ;;  %v473_v16 = vld [vmem:[%s629_s3 + $0x68] sm:$0xff]   ;;  %v462_v18 = vld [vmem:[%s627_s1 + $0x14] ss:$8 sps:$4 sm:$0xff]  }
   0x6   :  { %v470_v12 = vld [vmem:[%s629_s3 + $0x38] sm:$0xff]   ;;  %v472_v15 = vld [vmem:[%s629_s3 + $0x30] sm:$0xff]   ;;  %v461_v17 = vld [vmem:[%s627_s1 + $0x20] ss:$8 sps:$4 sm:$0xff]   ;;  %v53_v36 = vsub.s32 1, %v48_v35  ;;  %v49_v37 = vsub.s32 0, %v48_v35 }
   0x7   :  { %146 = vmatpush1.bf16.msra.mxu0 %v449_v4  ;;  %422 = vmatpush3.bf16.msra.mxu1 %v470_v12  ;;  %v474_v19 = vld [vmem:[%s629_s3 + $0x28] sm:$0xff]   ;;  %v475_v20 = vld [vmem:[%s629_s3 + $0x60] sm:$0xff]   ;;  %v464_v21 = vld [vmem:[%s627_s1 + $0x10] ss:$8 sps:$4 sm:$0xff]  }
   0x8   :  { %147 = vmatprep.subr.bf16.mxu0 %v450_v5  ;;  %423 = vmatprep.subr.bf16.mxu1 %v471_v14  ;;  %v476_v22 = vld [vmem:[%s629_s3 + $0x20] sm:$0xff]   ;;  %v477_v24 = vld [vmem:[%s629_s3 + $0x58] sm:$0xff]   ;;  %v479_v28 = vld [vmem:[%s629_s3 + $0x50] sm:$0xff]  }
   0x9   :  { %v465_v23 = vld [vmem:[%s627_s1 + $0x4] ss:$8 sps:$4 sm:$0xff]   ;;  %v467_v25 = vld [vmem:[%s627_s1] ss:$8 sps:$4 sm:$0xff]   ;;  %v478_v26 = vld [vmem:[%s629_s3 + $0x18] sm:$0xff]  }
   0xa   :  { %v468_v27 = vld [vmem:[%s628_s0] sm:$0xff]   ;;  %v480_v29 = vld [vmem:[%s629_s3 + $0x10] sm:$0xff]   ;;  %v481_v30 = vld [vmem:[%s629_s3 + $0x48] sm:$0xff]  }
   0xb   :  { %148 = vmatpush1.bf16.msra.mxu0 %v452_v6  ;;  %424 = vmatpush3.bf16.msra.mxu1 %v472_v15  ;;  %v482_v31 = vld [vmem:[%s629_s3 + $0x8] sm:$0xff]   ;;  %v483_v32 = vld [vmem:[%s629_s3 + $0x40] sm:$0xff]  }
   0xc   :  { %149 = vmatprep.subr.bf16.mxu0 %v453_v7  ;;  %425 = vmatprep.subr.bf16.mxu1 %v473_v16  ;;  %v484_v33 = vld [vmem:[%s629_s3] sm:$0xff]  }
   0xd   :  { %v45_v38 = vld [vmem:[%s630_s2] sm:$0x3] }
   0xe   :  { %v54_v40 = vrot.slane %v45_v38, %v53_v36  ;;  %v50_v41 = vrot.slane %v45_v38, %v49_v37  ;;  %v420_v57 = vld [vmem:[%s631_s4] ss:$0 sm:$0xff] }
   0xf   :  { %150 = vmatpush1.bf16.msra.mxu0 %v455_v8  ;;  %426 = vmatpush3.bf16.msra.mxu1 %v474_v19 }
  0x10   :  { %151 = vmatprep.subr.bf16.mxu0 %v456_v9  ;;  %427 = vmatprep.subr.bf16.mxu1 %v475_v20 }
  0x13   :  { %152 = vmatpush1.bf16.msra.mxu0 %v458_v11  ;;  %428 = vmatpush3.bf16.msra.mxu1 %v476_v22 }
  0x14   :  { %153 = vmatprep.subr.bf16.mxu0 %v459_v13  ;;  %429 = vmatprep.subr.bf16.mxu1 %v477_v24 }
  0x17   :  { %154 = vmatpush1.bf16.msra.mxu0 %v461_v17  ;;  %430 = vmatpush3.bf16.msra.mxu1 %v478_v26 }
  0x18   :  { %155 = vmatprep.subr.bf16.mxu0 %v462_v18  ;;  %431 = vmatprep.subr.bf16.mxu1 %v479_v28 }
  0x1b   :  { %156 = vmatpush1.bf16.msra.mxu0 %v464_v21  ;;  %432 = vmatpush3.bf16.msra.mxu1 %v480_v29 }
  0x1c   :  { %157 = vmatprep.subr.bf16.mxu0 %v465_v23  ;;  %433 = vmatprep.subr.bf16.mxu1 %v481_v30 }
  0x1f   :  { %158 = vmatpush1.bf16.msra.mxu0 %v467_v25  ;;  %434 = vmatpush3.bf16.msra.mxu1 %v482_v31 }
  0x20   :  { %435 = vmatprep.subr.bf16.mxu1 %v483_v32 }
  0x22   :  { %176 = vmatmul.mubr.bf16.vlgmr.msra.gmra.mxu0 %v468_v27 }
  0x23   :  { %436 = vmatpush3.bf16.msra.mxu1 %v484_v33 }
  0xe2   :  { %v177_v39 = vpop.f32.mrf.mxu0 }
  0xe3   :  { %v178_v46 = vadd.f32 %v177_v39, %v50_v41 }
  0xe4   :  { %v179_v42 = vpop.f32.mrf.mxu0 }
  0xe5   :  { %v180_v44 = vadd.f32 %v179_v42, %v54_v40  ;;  %v186_v52 = vmax.f32 %v178_v46, 0.0 }
  0xe6   :  { %v181_v43 = vpop.f32.mrf.mxu0 }
  0xe7   :  { %v182_v45 = vadd.f32 %v181_v43, %v50_v41  ;;  %v187_v50 = vmax.f32 %v180_v44, 0.0 }
  0xe8   :  { %v183_v47 = vpop.f32.mrf.mxu0 }
  0xe9   :  { %v184_v48 = vadd.f32 %v183_v47, %v54_v40  ;;  %v188_v49 = vmax.f32 %v182_v45, 0.0 }
  0xeb   :  { %v189_v51 = vmax.f32 %v184_v48, 0.0  ;;  %v192_v54 = vpack.c.bf16 %v188_v49, %v186_v52 }
  0xed   :  { %v193_v53 = vpack.c.bf16 %v189_v51, %v187_v50 }
  0xef   :  { %354 = vmatprep.mubr.bf16.mxu1 %v193_v53 }
  0xf0   :  { %355 = vmatmul.mubr.bf16.vlgmr.msra.gmra.mxu1 %v192_v54 }
 0x1b0   :  { %v437_v55 = vpop.f32.mrf.mxu1 }
 0x1b2   :  { %v438_v56 = vpop.f32.mrf.mxu1 }
 0x1b3   :  { %v439_v58 = vadd.f32 %v438_v56, %v437_v55 }
 0x1b4   :  { %v440_v59 = vpop.f32.mrf.mxu1 }
 0x1b5   :  { %v379_v60 = vadd.f32 %v439_v58, %v420_v57 }
 0x1b6   :  { %v441_v61 = vpop.f32.mrf.mxu1 }
 0x1b7   :  { %381 = vst [vmem:[%s632_s5] sm:$0xff] %v379_v60  ;;  %v442_v62 = vadd.f32 %v441_v61, %v440_v59 }
 0x1b9   :  { %v380_v63 = vadd.f32 %v442_v62, %v420_v57 }
 0x1bb   :  { %382 = vst [vmem:[%s632_s5 + $0x8] sm:$0xff] %v380_v63 }

</bundles_post_ra>
